<compile_context>
chip_gen: v6e
topology: v6e:2x2x1
jax: 0.10.0
libtpu: 0.0.40
codegen_flags: <defaults>
</compile_context>

<pallas_src>
import functools

import jax
import jax.numpy as jnp
from jax.experimental import pallas as pl
from jax.experimental.pallas import tpu as pltpu


def _softplus(v):
    # Numerically stable softplus: max(v,0) + log1p(exp(-|v|)) (VALU + EUP only).
    return jnp.maximum(v, 0.0) + jnp.log1p(jnp.exp(-jnp.abs(v)))


def _round_up(n, m):
    return pl.cdiv(n, m) * m


def _make_kernel(zx_dim, zy_dim, zd_dim, topic_dim, hidden, out_width):
    two_zx = 2 * zx_dim
    two_zy = 2 * zy_dim

    # Static column layout of the single lane-dense output slab.
    o_zx_loc = 0
    o_zx_scale = o_zx_loc + zx_dim
    o_zx = o_zx_scale + zx_dim
    o_zy_loc = o_zx + zx_dim
    o_zy_scale = o_zy_loc + zy_dim
    o_zy = o_zy_scale + zy_dim
    o_zd_loc = o_zy + zy_dim
    o_zd_scale = o_zd_loc + zd_dim
    o_zd = o_zd_scale + zd_dim
    o_alpha = o_zd + zd_dim
    o_topic = o_alpha + topic_dim
    o_end = o_topic + topic_dim
    pad = out_width - o_end

    def kernel(x_ref, eps_ref,
               w1_ref, b1_ref, wh_ref, bh_ref,
               w2h_ref, w2t_ref, b2_ref, wzd_ref, bzd_ref,
               out_ref):
        x = x_ref[...]                                            # (TB, FEAT) bf16

        # ---- fused first layer for all three branches: x @ [W1x | W1y | W1t] ----
        h = jnp.dot(x, w1_ref[...], preferred_element_type=jnp.float32) + b1_ref[...]
        h = jnp.maximum(h, 0.0)                                   # (TB, 3*hidden) f32
        h_b = h.astype(jnp.bfloat16)

        # ---- fused (block-diagonal) loc/scale/concentration heads ----
        heads = (jnp.dot(h_b, wh_ref[...], preferred_element_type=jnp.float32)
                 + bh_ref[...])                                   # (TB, 2zx+2zy+topic)

        zx_loc = heads[:, 0:zx_dim]
        zx_scale = _softplus(heads[:, zx_dim:two_zx]) + 1e-6
        zy_loc = heads[:, two_zx:two_zx + zy_dim]
        zy_scale = _softplus(heads[:, two_zx + zy_dim:two_zx + two_zy]) + 1e-6
        alpha = _softplus(heads[:, two_zx + two_zy:]) + 1e-6

        # TODO(synk): Dirichlet rsample needs gamma sampling (no clean Pallas
        # equivalent); use the Dirichlet mean alpha / sum(alpha) as the topic sample.
        topic = alpha * pl.reciprocal(jnp.sum(alpha, axis=-1, keepdims=True))

        # ---- sandwich encoder over (h_topic, topic); concat as split matmuls ----
        ht_b = h_b[:, 2 * hidden:3 * hidden]
        hd = (jnp.dot(ht_b, w2h_ref[...], preferred_element_type=jnp.float32)
              + jnp.dot(topic.astype(jnp.bfloat16), w2t_ref[...],
                        preferred_element_type=jnp.float32)
              + b2_ref[...])
        hd = jnp.maximum(hd, 0.0).astype(jnp.bfloat16)

        # ---- fused zd loc/scale head: hd @ [Wld | Wsd] ----
        zd_heads = (jnp.dot(hd, wzd_ref[...], preferred_element_type=jnp.float32)
                    + bzd_ref[...])
        zd_loc = zd_heads[:, 0:zd_dim]
        zd_scale = _softplus(zd_heads[:, zd_dim:]) + 1e-6

        # ---- Normal reparameterization samples ----
        eps = eps_ref[...]                                        # (TB, zx+zy+zd) f32
        zx = zx_loc + zx_scale * eps[:, 0:zx_dim]
        zy = zy_loc + zy_scale * eps[:, zx_dim:zx_dim + zy_dim]
        zd = zd_loc + zd_scale * eps[:, zx_dim + zy_dim:]

        # ---- assemble the whole tile in registers; ONE unmasked lane-dense store ----
        pieces = [zx_loc, zx_scale, zx,
                  zy_loc, zy_scale, zy,
                  zd_loc, zd_scale, zd,
                  alpha, topic]
        if pad > 0:
            pieces.append(jnp.zeros((x.shape[0], pad), jnp.float32))
        out_ref[...] = jnp.concatenate(pieces, axis=1)

    offsets = dict(zx_loc=o_zx_loc, zx_scale=o_zx_scale, zx=o_zx,
                   zy_loc=o_zy_loc, zy_scale=o_zy_scale, zy=o_zy,
                   zd_loc=o_zd_loc, zd_scale=o_zd_scale, zd=o_zd,
                   alpha=o_alpha, topic=o_topic)
    return kernel, offsets


def init_params(key, feat_dim, hidden, zx_dim, zy_dim, zd_dim, topic_dim):
    """Deterministic synthetic parameter init (matches the shapes __init__ implies)."""
    ks = jax.random.split(key, 16)

    def w(k, shape, fan_in):
        return jax.random.normal(k, shape, jnp.float32) / jnp.sqrt(float(fan_in))

    p = {}
    # zx encoder
    p["w1x"] = w(ks[0], (feat_dim, hidden), feat_dim); p["b1x"] = jnp.zeros((1, hidden), jnp.float32)
    p["wlx"] = w(ks[1], (hidden, zx_dim), hidden);     p["blx"] = jnp.zeros((1, zx_dim), jnp.float32)
    p["wsx"] = w(ks[2], (hidden, zx_dim), hidden);     p["bsx"] = jnp.zeros((1, zx_dim), jnp.float32)
    # zy encoder
    p["w1y"] = w(ks[3], (feat_dim, hidden), feat_dim); p["b1y"] = jnp.zeros((1, hidden), jnp.float32)
    p["wly"] = w(ks[4], (hidden, zy_dim), hidden);     p["bly"] = jnp.zeros((1, zy_dim), jnp.float32)
    p["wsy"] = w(ks[5], (hidden, zy_dim), hidden);     p["bsy"] = jnp.zeros((1, zy_dim), jnp.float32)
    # topic encoder
    p["w1t"] = w(ks[6], (feat_dim, hidden), feat_dim); p["b1t"] = jnp.zeros((1, hidden), jnp.float32)
    p["wc"]  = w(ks[7], (hidden, topic_dim), hidden);  p["bc"]  = jnp.zeros((1, topic_dim), jnp.float32)
    # zd sandwich encoder over (hidden, topic)
    p["w2h"] = w(ks[8], (hidden, hidden), hidden + topic_dim)
    p["w2t"] = w(ks[9], (topic_dim, hidden), hidden + topic_dim)
    p["b2"]  = jnp.zeros((1, hidden), jnp.float32)
    p["wld"] = w(ks[10], (hidden, zd_dim), hidden);    p["bld"] = jnp.zeros((1, zd_dim), jnp.float32)
    p["wsd"] = w(ks[11], (hidden, zd_dim), hidden);    p["bsd"] = jnp.zeros((1, zd_dim), jnp.float32)
    return p


def pack_params(params, *, zx_dim, zy_dim, zd_dim, topic_dim, hidden):
    """One-time repack: fuse first-layer/head weights and cast weights to bf16."""
    f32, bf16 = jnp.float32, jnp.bfloat16

    w1 = jnp.concatenate([params["w1x"], params["w1y"], params["w1t"]], axis=1)
    b1 = jnp.concatenate([params["b1x"], params["b1y"], params["b1t"]], axis=1)

    n_head = 2 * zx_dim + 2 * zy_dim + topic_dim
    wh = jnp.zeros((3 * hidden, n_head), f32)
    wh = wh.at[0:hidden, 0:2 * zx_dim].set(
        jnp.concatenate([params["wlx"], params["wsx"]], axis=1))
    wh = wh.at[hidden:2 * hidden, 2 * zx_dim:2 * zx_dim + 2 * zy_dim].set(
        jnp.concatenate([params["wly"], params["wsy"]], axis=1))
    wh = wh.at[2 * hidden:, 2 * zx_dim + 2 * zy_dim:].set(params["wc"])
    bh = jnp.concatenate([params["blx"], params["bsx"], params["bly"],
                          params["bsy"], params["bc"]], axis=1)

    return dict(
        w1=w1.astype(bf16), b1=b1.astype(f32),
        wh=wh.astype(bf16), bh=bh.astype(f32),
        w2h=params["w2h"].astype(bf16), w2t=params["w2t"].astype(bf16),
        b2=params["b2"].astype(f32),
        wzd=jnp.concatenate([params["wld"], params["wsd"]], axis=1).astype(bf16),
        bzd=jnp.concatenate([params["bld"], params["bsd"]], axis=1).astype(f32),
    )


@functools.partial(jax.jit, static_argnames=("zx_dim", "zy_dim", "zd_dim",
                                              "topic_dim", "hidden", "batch_tile"))
def xydt_encoder_forward(img, packed, eps_zx, eps_zy, eps_zd, *,
                         zx_dim, zy_dim, zd_dim, topic_dim, hidden, batch_tile=128):
    """Forward pass: returns (q_topic, topic_q, q_zd, zd_q, q_zx, zx_q, q_zy, zy_q)
    where q_topic = alpha and each q_z* = (loc, scale)."""
    b = img.shape[0]
    feat = 1
    for d in img.shape[1:]:
        feat *= d

    x = img.reshape(b, feat).astype(jnp.bfloat16)        # NCHW flattened row-major
    eps = jnp.concatenate([eps_zx, eps_zy, eps_zd], axis=1).astype(jnp.float32)

    # Adaptive batch tile: big tiles for MXU occupancy, clamped for tiny batches.
    tb = min(batch_tile, _round_up(b, 8))
    b_pad = _round_up(b, tb)
    if b_pad != b:
        x = jnp.pad(x, ((0, b_pad - b), (0, 0)))
        eps = jnp.pad(eps, ((0, b_pad - b), (0, 0)))

    n_head = 2 * zx_dim + 2 * zy_dim + topic_dim
    eps_w = zx_dim + zy_dim + zd_dim
    total = 3 * (zx_dim + zy_dim + zd_dim) + 2 * topic_dim
    out_width = _round_up(total, 128)                     # lane-dense output slab

    kernel, off = _make_kernel(zx_dim, zy_dim, zd_dim, topic_dim, hidden, out_width)

    def batch_spec(width):
        return pl.BlockSpec((tb, width), lambda i: (i, 0))

    def resident(shape):
        # Whole-array block, constant index map: DMA'd once, stays resident in VMEM.
        return pl.BlockSpec(shape, lambda i: (0, 0))

    in_specs = [
        batch_spec(feat),                         # x
        batch_spec(eps_w),                        # eps (zx|zy|zd noise)
        resident((feat, 3 * hidden)),             # w1  = [w1x | w1y | w1t]
        resident((1, 3 * hidden)),                # b1
        resident((3 * hidden, n_head)),           # wh  = blockdiag heads
        resident((1, n_head)),                    # bh
        resident((hidden, hidden)),               # w2h
        resident((topic_dim, hidden)),            # w2t
        resident((1, hidden)),                    # b2
        resident((hidden, 2 * zd_dim)),           # wzd = [wld | wsd]
        resident((1, 2 * zd_dim)),                # bzd
    ]
    out_specs = pl.BlockSpec((tb, out_width), lambda i: (i, 0))

    flops = 2 * b_pad * (feat * 3 * hidden + 3 * hidden * n_head
                         + hidden * hidden + topic_dim * hidden + hidden * 2 * zd_dim)
    transcendentals = 3 * b_pad * (zx_dim + zy_dim + zd_dim + topic_dim)
    bytes_accessed = (x.size * x.dtype.itemsize + eps.size * eps.dtype.itemsize
                      + sum(int(v.size) * v.dtype.itemsize for v in packed.values())
                      + b_pad * out_width * 4)

    out = pl.pallas_call(
        kernel,
        out_shape=jax.ShapeDtypeStruct((b_pad, out_width), jnp.float32),
        grid_spec=pltpu.PrefetchScalarGridSpec(
            num_scalar_prefetch=0,
            grid=(b_pad // tb,),
            in_specs=in_specs,
            out_specs=out_specs),
        compiler_params=pltpu.CompilerParams(
            dimension_semantics=("parallel",)),       # shards batch tiles on v7x (2 TCs)
        cost_estimate=pl.CostEstimate(flops=flops,
                                      transcendentals=transcendentals,
                                      bytes_accessed=bytes_accessed),
    )(x, eps, packed["w1"], packed["b1"], packed["wh"], packed["bh"],
      packed["w2h"], packed["w2t"], packed["b2"], packed["wzd"], packed["bzd"])

    def seg(name, width):
        o = off[name]
        return out[:b, o:o + width]

    alpha = seg("alpha", topic_dim)
    topic_q = seg("topic", topic_dim)
    q_zd = (seg("zd_loc", zd_dim), seg("zd_scale", zd_dim))
    zd_q = seg("zd", zd_dim)
    q_zx = (seg("zx_loc", zx_dim), seg("zx_scale", zx_dim))
    zx_q = seg("zx", zx_dim)
    q_zy = (seg("zy_loc", zy_dim), seg("zy_scale", zy_dim))
    zy_q = seg("zy", zy_dim)
    return (alpha, topic_q, q_zd, zd_q, q_zx, zx_q, q_zy, zy_q)


def infer_zy_loc(img, packed, *, zx_dim, zy_dim, zd_dim, topic_dim, hidden):
    """Mirror of XYDTEncoderElevator.infer_zy_loc: class-label head mean."""
    # NOTE: reuses the fused kernel with zero noise (correct); a dedicated zy-only
    # kernel would skip the zx/zd/topic branches if this path ever becomes hot.
    b = img.shape[0]
    zeros = lambda d: jnp.zeros((b, d), jnp.float32)
    out = xydt_encoder_forward(img, packed, zeros(zx_dim), zeros(zy_dim), zeros(zd_dim),
                               zx_dim=zx_dim, zy_dim=zy_dim, zd_dim=zd_dim,
                               topic_dim=topic_dim, hidden=hidden)
    return out[6][0]   # q_zy loc


def _reference_forward(img, packed, eps_zx, eps_zy, eps_zd, *,
                       zx_dim, zy_dim, zd_dim, topic_dim, hidden):
    """Pure-JAX mirror of the fused kernel (same bf16 casts) for validation."""
    f32, bf16 = jnp.float32, jnp.bfloat16
    b = img.shape[0]
    x = img.reshape(b, -1).astype(bf16)
    h = jnp.maximum(jnp.dot(x, packed["w1"], preferred_element_type=f32) + packed["b1"], 0.0)
    h_b = h.astype(bf16)
    heads = jnp.dot(h_b, packed["wh"], preferred_element_type=f32) + packed["bh"]
    zx_loc = heads[:, :zx_dim]
    zx_scale = _softplus(heads[:, zx_dim:2 * zx_dim]) + 1e-6
    zy_loc = heads[:, 2 * zx_dim:2 * zx_dim + zy_dim]
    zy_scale = _softplus(heads[:, 2 * zx_dim + zy_dim:2 * zx_dim + 2 * zy_dim]) + 1e-6
    alpha = _softplus(heads[:, 2 * zx_dim + 2 * zy_dim:]) + 1e-6
    topic = alpha / jnp.sum(alpha, axis=-1, keepdims=True)
    ht_b = h_b[:, 2 * hidden:]
    hd = jnp.maximum(jnp.dot(ht_b, packed["w2h"], preferred_element_type=f32)
                     + jnp.dot(topic.astype(bf16), packed["w2t"], preferred_element_type=f32)
                     + packed["b2"], 0.0).astype(bf16)
    zd_heads = jnp.dot(hd, packed["wzd"], preferred_element_type=f32) + packed["bzd"]
    zd_loc = zd_heads[:, :zd_dim]
    zd_scale = _softplus(zd_heads[:, zd_dim:]) + 1e-6
    return dict(alpha=alpha, topic=topic,
                zx_loc=zx_loc, zx=zx_loc + zx_scale * eps_zx,
                zy_loc=zy_loc, zy=zy_loc + zy_scale * eps_zy,
                zd_loc=zd_loc, zd=zd_loc + zd_scale * eps_zd)


if __name__ == "__main__":
    B, C, H, W = 2, 4, 16, 16
    HIDDEN = 64
    ZX, ZY, ZD, TOPIC = 32, 32, 32, 8
    FEAT = C * H * W

    key = jax.random.PRNGKey(0)
    k_img, k_par, k_ex, k_ey, k_ed = jax.random.split(key, 5)

    img = jax.random.normal(k_img, (B, C, H, W), jnp.float32)
    params = init_params(k_par, FEAT, HIDDEN, ZX, ZY, ZD, TOPIC)
    packed = pack_params(params, zx_dim=ZX, zy_dim=ZY, zd_dim=ZD,
                         topic_dim=TOPIC, hidden=HIDDEN)
    eps_zx = jax.random.normal(k_ex, (B, ZX), jnp.float32)
    eps_zy = jax.random.normal(k_ey, (B, ZY), jnp.float32)
    eps_zd = jax.random.normal(k_ed, (B, ZD), jnp.float32)

    out = xydt_encoder_forward(img, packed, eps_zx, eps_zy, eps_zd,
                               zx_dim=ZX, zy_dim=ZY, zd_dim=ZD,
                               topic_dim=TOPIC, hidden=HIDDEN)
    jax.block_until_ready(out)

    (q_topic, topic_q, q_zd, zd_q, q_zx, zx_q, q_zy, zy_q) = out
    assert q_topic.shape == (B, TOPIC) and topic_q.shape == (B, TOPIC)
    assert q_zd[0].shape == (B, ZD) and zd_q.shape == (B, ZD)
    assert q_zx[0].shape == (B, ZX) and zx_q.shape == (B, ZX)
    assert q_zy[0].shape == (B, ZY) and zy_q.shape == (B, ZY)
    assert bool(jnp.all(q_zd[1] > 0)) and bool(jnp.all(q_zx[1] > 0)) and bool(jnp.all(q_zy[1] > 0))
    assert bool(jnp.allclose(jnp.sum(topic_q, axis=-1), 1.0, atol=1e-5))

    # Cross-check against a pure-JAX mirror of the fused math (loose tol: bf16 path).
    ref = _reference_forward(img, packed, eps_zx, eps_zy, eps_zd,
                             zx_dim=ZX, zy_dim=ZY, zd_dim=ZD,
                             topic_dim=TOPIC, hidden=HIDDEN)
    checks = [(q_topic, ref["alpha"]), (topic_q, ref["topic"]),
              (q_zx[0], ref["zx_loc"]), (zx_q, ref["zx"]),
              (q_zy[0], ref["zy_loc"]), (zy_q, ref["zy"]),
              (q_zd[0], ref["zd_loc"]), (zd_q, ref["zd"])]
    for got, want in checks:
        assert bool(jnp.allclose(got, want, rtol=2e-2, atol=2e-2))

    zy_loc = infer_zy_loc(img, packed, zx_dim=ZX, zy_dim=ZY, zd_dim=ZD,
                          topic_dim=TOPIC, hidden=HIDDEN)
    jax.block_until_ready(zy_loc)
    assert zy_loc.shape == (B, ZY)

    print("KERNEL_OK")
</pallas_src>

<mosaic_0001>
module attributes {stable_mosaic.version = 11 : i64} {
  func.func @kernel(%arg0: i32, %arg1: memref<8x1024xbf16, #tpu.memory_space<vmem>>, %arg2: memref<8x96xf32, #tpu.memory_space<vmem>>, %arg3: memref<1024x192xbf16, #tpu.memory_space<vmem>>, %arg4: memref<1x192xf32, #tpu.memory_space<vmem>>, %arg5: memref<192x136xbf16, #tpu.memory_space<vmem>>, %arg6: memref<1x136xf32, #tpu.memory_space<vmem>>, %arg7: memref<64x64xbf16, #tpu.memory_space<vmem>>, %arg8: memref<8x64xbf16, #tpu.memory_space<vmem>>, %arg9: memref<1x64xf32, #tpu.memory_space<vmem>>, %arg10: memref<64x64xbf16, #tpu.memory_space<vmem>>, %arg11: memref<1x64xf32, #tpu.memory_space<vmem>>, %arg12: memref<8x384xf32, #tpu.memory_space<vmem>>) attributes {dimension_semantics = [#tpu.dimension_semantics<parallel>], iteration_bounds = array<i64: 1>, scalar_prefetch = 0 : i64, scratch_operands = 0 : i64, tpu.core_type = #tpu.core_type<tc>, window_params = [{transform_indices = @transform_0, window_bounds = array<i64: 8, 1024>}, {transform_indices = @transform_1, window_bounds = array<i64: 8, 96>}, {pipeline_mode = #tpu.pipeline_mode<synchronous>, transform_indices = @transform_2, window_bounds = array<i64: 1024, 192>}, {pipeline_mode = #tpu.pipeline_mode<synchronous>, transform_indices = @transform_3, window_bounds = array<i64: 1, 192>}, {pipeline_mode = #tpu.pipeline_mode<synchronous>, transform_indices = @transform_4, window_bounds = array<i64: 192, 136>}, {pipeline_mode = #tpu.pipeline_mode<synchronous>, transform_indices = @transform_5, window_bounds = array<i64: 1, 136>}, {pipeline_mode = #tpu.pipeline_mode<synchronous>, transform_indices = @transform_6, window_bounds = array<i64: 64, 64>}, {pipeline_mode = #tpu.pipeline_mode<synchronous>, transform_indices = @transform_7, window_bounds = array<i64: 8, 64>}, {pipeline_mode = #tpu.pipeline_mode<synchronous>, transform_indices = @transform_8, window_bounds = array<i64: 1, 64>}, {pipeline_mode = #tpu.pipeline_mode<synchronous>, transform_indices = @transform_9, window_bounds = array<i64: 64, 64>}, {pipeline_mode = #tpu.pipeline_mode<synchronous>, transform_indices = @transform_10, window_bounds = array<i64: 1, 64>}, {transform_indices = @transform_11, window_bounds = array<i64: 8, 384>}]} {
    %c0 = arith.constant 0 : index
    %c0_0 = arith.constant 0 : index
    %0 = vector.load %arg1[%c0, %c0_0] : memref<8x1024xbf16, #tpu.memory_space<vmem>>, vector<8x1024xbf16>
    %c0_1 = arith.constant 0 : index
    %c0_2 = arith.constant 0 : index
    %1 = vector.load %arg3[%c0_1, %c0_2] : memref<1024x192xbf16, #tpu.memory_space<vmem>>, vector<1024x192xbf16>
    %cst = arith.constant dense<0.000000e+00> : vector<8x192xf32>
    %2 = tpu.matmul %0, %1, %cst {dimension_numbers = #tpu.dot_dimension_numbers<[1], [0], [0], [1], [0, 0, 1, 1], [], []>} : vector<8x1024xbf16>, vector<1024x192xbf16>, vector<8x192xf32> -> vector<8x192xf32>
    %c0_3 = arith.constant 0 : index
    %c0_4 = arith.constant 0 : index
    %3 = vector.load %arg4[%c0_3, %c0_4] : memref<1x192xf32, #tpu.memory_space<vmem>>, vector<1x192xf32>
    %4 = vector.broadcast %3 : vector<1x192xf32> to vector<8x192xf32>
    %5 = arith.addf %2, %4 : vector<8x192xf32>
    %cst_5 = arith.constant 0.000000e+00 : f32
    %6 = vector.broadcast %cst_5 : f32 to vector<8x192xf32>
    %7 = arith.maximumf %5, %6 : vector<8x192xf32>
    %8 = arith.truncf %7 : vector<8x192xf32> to vector<8x192xbf16>
    %c0_6 = arith.constant 0 : index
    %c0_7 = arith.constant 0 : index
    %9 = vector.load %arg5[%c0_6, %c0_7] : memref<192x136xbf16, #tpu.memory_space<vmem>>, vector<192x136xbf16>
    %cst_8 = arith.constant dense<0.000000e+00> : vector<8x136xf32>
    %10 = tpu.matmul %8, %9, %cst_8 {dimension_numbers = #tpu.dot_dimension_numbers<[1], [0], [0], [1], [0, 0, 1, 1], [], []>} : vector<8x192xbf16>, vector<192x136xbf16>, vector<8x136xf32> -> vector<8x136xf32>
    %c0_9 = arith.constant 0 : index
    %c0_10 = arith.constant 0 : index
    %11 = vector.load %arg6[%c0_9, %c0_10] : memref<1x136xf32, #tpu.memory_space<vmem>>, vector<1x136xf32>
    %12 = vector.broadcast %11 : vector<1x136xf32> to vector<8x136xf32>
    %13 = arith.addf %10, %12 : vector<8x136xf32>
    %14 = vector.extract_strided_slice %13 {offsets = [0, 0], sizes = [8, 32], strides = [1, 1]} : vector<8x136xf32> to vector<8x32xf32>
    %15 = vector.extract_strided_slice %13 {offsets = [0, 32], sizes = [8, 32], strides = [1, 1]} : vector<8x136xf32> to vector<8x32xf32>
    %cst_11 = arith.constant 0.000000e+00 : f32
    %16 = vector.broadcast %cst_11 : f32 to vector<8x32xf32>
    %17 = arith.maximumf %15, %16 : vector<8x32xf32>
    %18 = math.absf %15 : vector<8x32xf32>
    %cst_12 = arith.constant 0.000000e+00 : f32
    %19 = vector.broadcast %cst_12 : f32 to vector<8x32xf32>
    %20 = arith.subf %19, %18 : vector<8x32xf32>
    %21 = math.exp %20 : vector<8x32xf32>
    %22 = math.log1p %21 : vector<8x32xf32>
    %23 = arith.addf %17, %22 : vector<8x32xf32>
    %cst_13 = arith.constant 9.99999997E-7 : f32
    %24 = vector.broadcast %cst_13 : f32 to vector<8x32xf32>
    %25 = arith.addf %23, %24 : vector<8x32xf32>
    %26 = vector.extract_strided_slice %13 {offsets = [0, 64], sizes = [8, 32], strides = [1, 1]} : vector<8x136xf32> to vector<8x32xf32>
    %27 = vector.extract_strided_slice %13 {offsets = [0, 96], sizes = [8, 32], strides = [1, 1]} : vector<8x136xf32> to vector<8x32xf32>
    %cst_14 = arith.constant 0.000000e+00 : f32
    %28 = vector.broadcast %cst_14 : f32 to vector<8x32xf32>
    %29 = arith.maximumf %27, %28 : vector<8x32xf32>
    %30 = math.absf %27 : vector<8x32xf32>
    %cst_15 = arith.constant 0.000000e+00 : f32
    %31 = vector.broadcast %cst_15 : f32 to vector<8x32xf32>
    %32 = arith.subf %31, %30 : vector<8x32xf32>
    %33 = math.exp %32 : vector<8x32xf32>
    %34 = math.log1p %33 : vector<8x32xf32>
    %35 = arith.addf %29, %34 : vector<8x32xf32>
    %cst_16 = arith.constant 9.99999997E-7 : f32
    %36 = vector.broadcast %cst_16 : f32 to vector<8x32xf32>
    %37 = arith.addf %35, %36 : vector<8x32xf32>
    %38 = vector.extract_strided_slice %13 {offsets = [0, 128], sizes = [8, 8], strides = [1, 1]} : vector<8x136xf32> to vector<8x8xf32>
    %cst_17 = arith.constant 0.000000e+00 : f32
    %39 = vector.broadcast %cst_17 : f32 to vector<8x8xf32>
    %40 = arith.maximumf %38, %39 : vector<8x8xf32>
    %41 = math.absf %38 : vector<8x8xf32>
    %cst_18 = arith.constant 0.000000e+00 : f32
    %42 = vector.broadcast %cst_18 : f32 to vector<8x8xf32>
    %43 = arith.subf %42, %41 : vector<8x8xf32>
    %44 = math.exp %43 : vector<8x8xf32>
    %45 = math.log1p %44 : vector<8x8xf32>
    %46 = arith.addf %40, %45 : vector<8x8xf32>
    %cst_19 = arith.constant 9.99999997E-7 : f32
    %47 = vector.broadcast %cst_19 : f32 to vector<8x8xf32>
    %48 = arith.addf %46, %47 : vector<8x8xf32>
    %cst_20 = arith.constant dense<0.000000e+00> : vector<8xf32>
    %49 = vector.multi_reduction <add>, %48, %cst_20 [1] : vector<8x8xf32> to vector<8xf32>
    %50 = vector.shape_cast %49 : vector<8xf32> to vector<8x1xf32>
    %51 = tpu.reciprocal %50 : vector<8x1xf32> -> vector<8x1xf32>
    %52 = vector.broadcast %51 : vector<8x1xf32> to vector<8x8xf32>
    %53 = arith.mulf %48, %52 : vector<8x8xf32>
    %54 = vector.extract_strided_slice %8 {offsets = [0, 128], sizes = [8, 64], strides = [1, 1]} : vector<8x192xbf16> to vector<8x64xbf16>
    %c0_21 = arith.constant 0 : index
    %c0_22 = arith.constant 0 : index
    %55 = vector.load %arg7[%c0_21, %c0_22] : memref<64x64xbf16, #tpu.memory_space<vmem>>, vector<64x64xbf16>
    %cst_23 = arith.constant dense<0.000000e+00> : vector<8x64xf32>
    %56 = tpu.matmul %54, %55, %cst_23 {dimension_numbers = #tpu.dot_dimension_numbers<[1], [0], [0], [1], [0, 0, 1, 1], [], []>} : vector<8x64xbf16>, vector<64x64xbf16>, vector<8x64xf32> -> vector<8x64xf32>
    %57 = arith.truncf %53 : vector<8x8xf32> to vector<8x8xbf16>
    %c0_24 = arith.constant 0 : index
    %c0_25 = arith.constant 0 : index
    %58 = vector.load %arg8[%c0_24, %c0_25] : memref<8x64xbf16, #tpu.memory_space<vmem>>, vector<8x64xbf16>
    %cst_26 = arith.constant dense<0.000000e+00> : vector<8x64xf32>
    %59 = tpu.matmul %57, %58, %cst_26 {dimension_numbers = #tpu.dot_dimension_numbers<[1], [0], [0], [1], [0, 0, 1, 1], [], []>} : vector<8x8xbf16>, vector<8x64xbf16>, vector<8x64xf32> -> vector<8x64xf32>
    %60 = arith.addf %56, %59 : vector<8x64xf32>
    %c0_27 = arith.constant 0 : index
    %c0_28 = arith.constant 0 : index
    %61 = vector.load %arg9[%c0_27, %c0_28] : memref<1x64xf32, #tpu.memory_space<vmem>>, vector<1x64xf32>
    %62 = vector.broadcast %61 : vector<1x64xf32> to vector<8x64xf32>
    %63 = arith.addf %60, %62 : vector<8x64xf32>
    %cst_29 = arith.constant 0.000000e+00 : f32
    %64 = vector.broadcast %cst_29 : f32 to vector<8x64xf32>
    %65 = arith.maximumf %63, %64 : vector<8x64xf32>
    %66 = arith.truncf %65 : vector<8x64xf32> to vector<8x64xbf16>
    %c0_30 = arith.constant 0 : index
    %c0_31 = arith.constant 0 : index
    %67 = vector.load %arg10[%c0_30, %c0_31] : memref<64x64xbf16, #tpu.memory_space<vmem>>, vector<64x64xbf16>
    %cst_32 = arith.constant dense<0.000000e+00> : vector<8x64xf32>
    %68 = tpu.matmul %66, %67, %cst_32 {dimension_numbers = #tpu.dot_dimension_numbers<[1], [0], [0], [1], [0, 0, 1, 1], [], []>} : vector<8x64xbf16>, vector<64x64xbf16>, vector<8x64xf32> -> vector<8x64xf32>
    %c0_33 = arith.constant 0 : index
    %c0_34 = arith.constant 0 : index
    %69 = vector.load %arg11[%c0_33, %c0_34] : memref<1x64xf32, #tpu.memory_space<vmem>>, vector<1x64xf32>
    %70 = vector.broadcast %69 : vector<1x64xf32> to vector<8x64xf32>
    %71 = arith.addf %68, %70 : vector<8x64xf32>
    %72 = vector.extract_strided_slice %71 {offsets = [0, 0], sizes = [8, 32], strides = [1, 1]} : vector<8x64xf32> to vector<8x32xf32>
    %73 = vector.extract_strided_slice %71 {offsets = [0, 32], sizes = [8, 32], strides = [1, 1]} : vector<8x64xf32> to vector<8x32xf32>
    %cst_35 = arith.constant 0.000000e+00 : f32
    %74 = vector.broadcast %cst_35 : f32 to vector<8x32xf32>
    %75 = arith.maximumf %73, %74 : vector<8x32xf32>
    %76 = math.absf %73 : vector<8x32xf32>
    %cst_36 = arith.constant 0.000000e+00 : f32
    %77 = vector.broadcast %cst_36 : f32 to vector<8x32xf32>
    %78 = arith.subf %77, %76 : vector<8x32xf32>
    %79 = math.exp %78 : vector<8x32xf32>
    %80 = math.log1p %79 : vector<8x32xf32>
    %81 = arith.addf %75, %80 : vector<8x32xf32>
    %cst_37 = arith.constant 9.99999997E-7 : f32
    %82 = vector.broadcast %cst_37 : f32 to vector<8x32xf32>
    %83 = arith.addf %81, %82 : vector<8x32xf32>
    %c0_38 = arith.constant 0 : index
    %c0_39 = arith.constant 0 : index
    %84 = vector.load %arg2[%c0_38, %c0_39] : memref<8x96xf32, #tpu.memory_space<vmem>>, vector<8x96xf32>
    %85 = vector.extract_strided_slice %84 {offsets = [0, 0], sizes = [8, 32], strides = [1, 1]} : vector<8x96xf32> to vector<8x32xf32>
    %86 = arith.mulf %25, %85 : vector<8x32xf32>
    %87 = arith.addf %14, %86 : vector<8x32xf32>
    %88 = vector.extract_strided_slice %84 {offsets = [0, 32], sizes = [8, 32], strides = [1, 1]} : vector<8x96xf32> to vector<8x32xf32>
    %89 = arith.mulf %37, %88 : vector<8x32xf32>
    %90 = arith.addf %26, %89 : vector<8x32xf32>
    %91 = vector.extract_strided_slice %84 {offsets = [0, 64], sizes = [8, 32], strides = [1, 1]} : vector<8x96xf32> to vector<8x32xf32>
    %92 = arith.mulf %83, %91 : vector<8x32xf32>
    %93 = arith.addf %72, %92 : vector<8x32xf32>
    %cst_40 = arith.constant 0.000000e+00 : f32
    %94 = vector.broadcast %cst_40 : f32 to vector<8x80xf32>
    %95 = tpu.concatenate %14, %25, %87, %26, %37, %90, %72, %83, %93, %48, %53, %94 in 1 : vector<8x32xf32>, vector<8x32xf32>, vector<8x32xf32>, vector<8x32xf32>, vector<8x32xf32>, vector<8x32xf32>, vector<8x32xf32>, vector<8x32xf32>, vector<8x32xf32>, vector<8x8xf32>, vector<8x8xf32>, vector<8x80xf32> -> vector<8x384xf32>
    %c0_41 = arith.constant 0 : index
    %c0_42 = arith.constant 0 : index
    %96 = vector.load %arg12[%c0_41, %c0_42] : memref<8x384xf32, #tpu.memory_space<vmem>>, vector<8x384xf32>
    tpu.vector_store %arg12[%c0_41, %c0_42], %95 {strides = array<i32>} : memref<8x384xf32, #tpu.memory_space<vmem>>, vector<8x384xf32>,
    return
  }
  func.func @transform_0(%arg0: i32) -> (i32, i32) {
    %c0_i32 = arith.constant 0 : i32
    %c0_i32_0 = arith.constant 0 : i32
    return %arg0, %c0_i32 : i32, i32
  }
  func.func @transform_1(%arg0: i32) -> (i32, i32) {
    %c0_i32 = arith.constant 0 : i32
    %c0_i32_0 = arith.constant 0 : i32
    return %arg0, %c0_i32 : i32, i32
  }
  func.func @transform_2(%arg0: i32) -> (i32, i32) {
    %c0_i32 = arith.constant 0 : i32
    %c0_i32_0 = arith.constant 0 : i32
    %c0_i32_1 = arith.constant 0 : i32
    return %c0_i32, %c0_i32_0 : i32, i32
  }
  func.func @transform_3(%arg0: i32) -> (i32, i32) {
    %c0_i32 = arith.constant 0 : i32
    %c0_i32_0 = arith.constant 0 : i32
    %c0_i32_1 = arith.constant 0 : i32
    return %c0_i32, %c0_i32_0 : i32, i32
  }
  func.func @transform_4(%arg0: i32) -> (i32, i32) {
    %c0_i32 = arith.constant 0 : i32
    %c0_i32_0 = arith.constant 0 : i32
    %c0_i32_1 = arith.constant 0 : i32
    return %c0_i32, %c0_i32_0 : i32, i32
  }
  func.func @transform_5(%arg0: i32) -> (i32, i32) {
    %c0_i32 = arith.constant 0 : i32
    %c0_i32_0 = arith.constant 0 : i32
    %c0_i32_1 = arith.constant 0 : i32
    return %c0_i32, %c0_i32_0 : i32, i32
  }
  func.func @transform_6(%arg0: i32) -> (i32, i32) {
    %c0_i32 = arith.constant 0 : i32
    %c0_i32_0 = arith.constant 0 : i32
    %c0_i32_1 = arith.constant 0 : i32
    return %c0_i32, %c0_i32_0 : i32, i32
  }
  func.func @transform_7(%arg0: i32) -> (i32, i32) {
    %c0_i32 = arith.constant 0 : i32
    %c0_i32_0 = arith.constant 0 : i32
    %c0_i32_1 = arith.constant 0 : i32
    return %c0_i32, %c0_i32_0 : i32, i32
  }
  func.func @transform_8(%arg0: i32) -> (i32, i32) {
    %c0_i32 = arith.constant 0 : i32
    %c0_i32_0 = arith.constant 0 : i32
    %c0_i32_1 = arith.constant 0 : i32
    return %c0_i32, %c0_i32_0 : i32, i32
  }
  func.func @transform_9(%arg0: i32) -> (i32, i32) {
    %c0_i32 = arith.constant 0 : i32
    %c0_i32_0 = arith.constant 0 : i32
    %c0_i32_1 = arith.constant 0 : i32
    return %c0_i32, %c0_i32_0 : i32, i32
  }
  func.func @transform_10(%arg0: i32) -> (i32, i32) {
    %c0_i32 = arith.constant 0 : i32
    %c0_i32_0 = arith.constant 0 : i32
    %c0_i32_1 = arith.constant 0 : i32
    return %c0_i32, %c0_i32_0 : i32, i32
  }
  func.func @transform_11(%arg0: i32) -> (i32, i32) {
    %c0_i32 = arith.constant 0 : i32
    %c0_i32_0 = arith.constant 0 : i32
    return %arg0, %c0_i32 : i32, i32
  }
}

</mosaic_0001>

<bundles_post_ra>
// kernel: xydt_encoder_forward.1
= control target key start
LH: loop header
LB: loop body
LE: loop exit
PB: predicated region body
PF: predicated region fallthrough
CT: control target
= control target key end

     0   :  { %s2048_s18 = smov 32   ;;  %vm1175_vm0 = vcmask 523264   ;;  %vm1252_vm2 = vcmask 64512   ;;  %vm1271_vm3 = vcmask 1043456   ;;  %s2051_s21 = smov 64   ;;  %vm2052_vm4 = vmmov 0   ;;  %s2716_s2 = inlined_call_operand.vmem [shape: bf16[1024,192], index: 2, kind: input, shape index: {}]   ;;  %s2717_s0 = inlined_call_operand.vmem [shape: bf16[8,1024], index: 0, kind: input, shape index: {}]   ;;  %s2718_s4 = inlined_call_operand.vmem [shape: bf16[192,136], index: 4, kind: input, shape index: {}]   ;;  %s2719_s1 = inlined_call_operand.vmem [shape: f32[8,96], index: 1, kind: input, shape index: {}]   ;;  %s2720_s3 = inlined_call_operand.vmem [shape: f32[1,192], index: 3, kind: input, shape index: {}]   ;;  %s2721_s5 = inlined_call_operand.vmem [shape: f32[1,136], index: 5, kind: input, shape index: {}]   ;;  %s2722_s7 = inlined_call_operand.vmem [shape: bf16[8,64], index: 7, kind: input, shape index: {}]   ;;  %s2723_s6 = inlined_call_operand.vmem [shape: bf16[64,64], index: 6, kind: input, shape index: {}]   ;;  %s2724_s9 = inlined_call_operand.vmem [shape: bf16[64,64], index: 9, kind: input, shape index: {}]   ;;  %s2725_s8 = inlined_call_operand.vmem [shape: f32[1,64], index: 8, kind: input, shape index: {}]   ;;  %s2726_s10 = inlined_call_operand.vmem [shape: f32[1,64], index: 10, kind: input, shape index: {}]   ;;  %s2727_s11 = inlined_call_operand.vmem [shape: f32[8,384], index: 11, kind: output, shape index: {}]  }
   0x1   :  { %v1790_v0 = vld [vmem:[%s2716_s2 + $0x74] ss:$8 sps:$4 sm:$0xff]   ;;  %v1794_v2 = vld [vmem:[%s2716_s2 + $0x70] ss:$8 sps:$4 sm:$0xff]   ;;  %v1796_v4 = vld [vmem:[%s2716_s2 + $0x64] ss:$8 sps:$4 sm:$0xff]  }
   0x2   :  { %v1792_v1 = vld [vmem:[%s2716_s2 + $0x174] ss:$8 sps:$4 sm:$0xff]   ;;  %851 = vmatprep.subr.bf16.mxu0 %v1790_v0  ;;  %v1795_v3 = vld [vmem:[%s2716_s2 + $0x170] ss:$8 sps:$4 sm:$0xff]   ;;  %v1798_v5 = vld [vmem:[%s2716_s2 + $0x164] ss:$8 sps:$4 sm:$0xff]  }
   0x3   :  { %892 = vmatprep.subr.bf16.mxu1 %v1792_v1  ;;  %852 = vmatpush1.bf16.msra.mxu0 %v1794_v2  ;;  %v1800_v6 = vld [vmem:[%s2716_s2 + $0x60] ss:$8 sps:$4 sm:$0xff]   ;;  %v1802_v8 = vld [vmem:[%s2716_s2 + $0x54] ss:$8 sps:$4 sm:$0xff]   ;;  %v1806_v10 = vld [vmem:[%s2716_s2 + $0x50] ss:$8 sps:$4 sm:$0xff]  }
   0x4   :  { %893 = vmatpush1.bf16.msra.mxu1 %v1795_v3  ;;  %853 = vmatprep.subr.bf16.mxu0 %v1796_v4  ;;  %v1801_v7 = vld [vmem:[%s2716_s2 + $0x160] ss:$8 sps:$4 sm:$0xff]   ;;  %v1804_v9 = vld [vmem:[%s2716_s2 + $0x154] ss:$8 sps:$4 sm:$0xff]   ;;  %v1807_v11 = vld [vmem:[%s2716_s2 + $0x150] ss:$8 sps:$4 sm:$0xff]  }
   0x5   :  { %894 = vmatprep.subr.bf16.mxu1 %v1798_v5  ;;  %v1808_v12 = vld [vmem:[%s2716_s2 + $0x44] ss:$8 sps:$4 sm:$0xff]   ;;  %v1812_v14 = vld [vmem:[%s2716_s2 + $0x40] ss:$8 sps:$4 sm:$0xff]   ;;  %v1814_v16 = vld [vmem:[%s2716_s2 + $0x34] ss:$8 sps:$4 sm:$0xff]  }
   0x6   :  { %v1810_v13 = vld [vmem:[%s2716_s2 + $0x144] ss:$8 sps:$4 sm:$0xff]   ;;  %v1813_v15 = vld [vmem:[%s2716_s2 + $0x140] ss:$8 sps:$4 sm:$0xff]   ;;  %v1816_v17 = vld [vmem:[%s2716_s2 + $0x134] ss:$8 sps:$4 sm:$0xff]  }
   0x7   :  { %854 = vmatpush1.bf16.msra.mxu0 %v1800_v6  ;;  %v1818_v18 = vld [vmem:[%s2716_s2 + $0x30] ss:$8 sps:$4 sm:$0xff]   ;;  %v1820_v20 = vld [vmem:[%s2716_s2 + $0x24] ss:$8 sps:$4 sm:$0xff]   ;;  %v1824_v22 = vld [vmem:[%s2716_s2 + $0x20] ss:$8 sps:$4 sm:$0xff]  }
   0x8   :  { %895 = vmatpush1.bf16.msra.mxu1 %v1801_v7  ;;  %855 = vmatprep.subr.bf16.mxu0 %v1802_v8  ;;  %v1819_v19 = vld [vmem:[%s2716_s2 + $0x130] ss:$8 sps:$4 sm:$0xff]   ;;  %v1822_v21 = vld [vmem:[%s2716_s2 + $0x124] ss:$8 sps:$4 sm:$0xff]   ;;  %v1825_v23 = vld [vmem:[%s2716_s2 + $0x120] ss:$8 sps:$4 sm:$0xff]  }
   0x9   :  { %896 = vmatprep.subr.bf16.mxu1 %v1804_v9  ;;  %v1826_v24 = vld [vmem:[%s2716_s2 + $0x14] ss:$8 sps:$4 sm:$0xff]   ;;  %v1830_v26 = vld [vmem:[%s2716_s2 + $0x10] ss:$8 sps:$4 sm:$0xff]   ;;  %v1832_v28 = vld [vmem:[%s2716_s2 + $0x4] ss:$8 sps:$4 sm:$0xff]  }
   0xa   :  { %v1828_v25 = vld [vmem:[%s2716_s2 + $0x114] ss:$8 sps:$4 sm:$0xff]   ;;  %v1831_v27 = vld [vmem:[%s2716_s2 + $0x110] ss:$8 sps:$4 sm:$0xff]   ;;  %v1834_v29 = vld [vmem:[%s2716_s2 + $0x104] ss:$8 sps:$4 sm:$0xff]  }
   0xb   :  { %856 = vmatpush1.bf16.msra.mxu0 %v1806_v10  ;;  %v1836_v30 = vld [vmem:[%s2716_s2] ss:$8 sps:$4 sm:$0xff]   ;;  %v1838_v32 = vld [vmem:[%s2716_s2 + $0xf4] ss:$8 sps:$4 sm:$0xff]   ;;  %v1842_v34 = vld [vmem:[%s2716_s2 + $0xf0] ss:$8 sps:$4 sm:$0xff]  }
   0xc   :  { %897 = vmatpush1.bf16.msra.mxu1 %v1807_v11  ;;  %857 = vmatprep.subr.bf16.mxu0 %v1808_v12  ;;  %v1837_v31 = vld [vmem:[%s2716_s2 + $0x100] ss:$8 sps:$4 sm:$0xff]   ;;  %v1840_v33 = vld [vmem:[%s2716_s2 + $0x1f4] ss:$8 sps:$4 sm:$0xff]   ;;  %v1843_v35 = vld [vmem:[%s2716_s2 + $0x1f0] ss:$8 sps:$4 sm:$0xff]  }
   0xd   :  { %898 = vmatprep.subr.bf16.mxu1 %v1810_v13  ;;  %v1844_v36 = vld [vmem:[%s2716_s2 + $0xe4] ss:$8 sps:$4 sm:$0xff]   ;;  %v1848_v38 = vld [vmem:[%s2716_s2 + $0xe0] ss:$8 sps:$4 sm:$0xff]   ;;  %v1850_v40 = vld [vmem:[%s2716_s2 + $0xd4] ss:$8 sps:$4 sm:$0xff]  }
   0xe   :  { %v1846_v37 = vld [vmem:[%s2716_s2 + $0x1e4] ss:$8 sps:$4 sm:$0xff]   ;;  %v1849_v39 = vld [vmem:[%s2716_s2 + $0x1e0] ss:$8 sps:$4 sm:$0xff]   ;;  %v1852_v41 = vld [vmem:[%s2716_s2 + $0x1d4] ss:$8 sps:$4 sm:$0xff]  }
   0xf   :  { %858 = vmatpush1.bf16.msra.mxu0 %v1812_v14  ;;  %v1854_v42 = vld [vmem:[%s2716_s2 + $0xd0] ss:$8 sps:$4 sm:$0xff]   ;;  %v1856_v44 = vld [vmem:[%s2716_s2 + $0xc4] ss:$8 sps:$4 sm:$0xff]   ;;  %v1860_v49 = vld [vmem:[%s2716_s2 + $0xc0] ss:$8 sps:$4 sm:$0xff]  }
  0x10   :  { %899 = vmatpush1.bf16.msra.mxu1 %v1813_v15  ;;  %859 = vmatprep.subr.bf16.mxu0 %v1814_v16  ;;  %v1855_v43 = vld [vmem:[%s2716_s2 + $0x1d0] ss:$8 sps:$4 sm:$0xff]   ;;  %v1858_v45 = vld [vmem:[%s2716_s2 + $0x1c4] ss:$8 sps:$4 sm:$0xff]   ;;  %v1861_v50 = vld [vmem:[%s2716_s2 + $0x1c0] ss:$8 sps:$4 sm:$0xff]  }
  0x11   :  { %900 = vmatprep.subr.bf16.mxu1 %v1816_v17  ;;  %v39_v46 = vld [vmem:[%s2717_s0] sm:$0xff]  ;;  %v40_v48 = vld [vmem:[%s2717_s0 + $0x8] sm:$0xff]  ;;  %v1862_v52 = vld [vmem:[%s2716_s2 + $0xb4] ss:$8 sps:$4 sm:$0xff]   ;;  %s2053_s16 = smov 40   ;;  %vm1548_vm7 = vcmask 261120  }
  0x12   :  { %v1569_v47 = vcombine.high %v39_v46, %v39_v46  ;;  %v1571_v51 = vcombine.high %v40_v48, %v40_v48  ;;  %v1864_v53 = vld [vmem:[%s2716_s2 + $0x1b4] ss:$8 sps:$4 sm:$0xff]   ;;  %v1866_v54 = vld [vmem:[%s2716_s2 + $0xb0] ss:$8 sps:$4 sm:$0xff]   ;;  %v1868_v56 = vld [vmem:[%s2716_s2 + $0xa4] ss:$8 sps:$4 sm:$0xff]   ;;  %v1568_v6 = vcombine.low %v39_v46, %v39_v46  ;;  %v1570_v7 = vcombine.low %v40_v48, %v40_v48 }
  0x13   :  { %860 = vmatpush1.bf16.msra.mxu0 %v1818_v18  ;;  %v1867_v55 = vld [vmem:[%s2716_s2 + $0x1b0] ss:$8 sps:$4 sm:$0xff]   ;;  %v1870_v57 = vld [vmem:[%s2716_s2 + $0x1a4] ss:$8 sps:$4 sm:$0xff]   ;;  %v1872_v58 = vld [vmem:[%s2716_s2 + $0xa0] ss:$8 sps:$4 sm:$0xff]  }
  0x14   :  { %901 = vmatpush1.bf16.msra.mxu1 %v1819_v19  ;;  %861 = vmatprep.subr.bf16.mxu0 %v1820_v20  ;;  %v1873_v59 = vld [vmem:[%s2716_s2 + $0x1a0] ss:$8 sps:$4 sm:$0xff]   ;;  %v1874_v60 = vld [vmem:[%s2716_s2 + $0x94] ss:$8 sps:$4 sm:$0xff]   ;;  %v1878_v62 = vld [vmem:[%s2716_s2 + $0x90] ss:$8 sps:$4 sm:$0xff]  }
  0x15   :  { %902 = vmatprep.subr.bf16.mxu1 %v1822_v21  ;;  %883 = vmatprep.mubr.bf16.mxu0 %v1569_v47  ;;  %v1876_v61 = vld [vmem:[%s2716_s2 + $0x194] ss:$8 sps:$4 sm:$0xff]   ;;  %v1879_v63 = vld [vmem:[%s2716_s2 + $0x190] ss:$8 sps:$4 sm:$0xff]   ;;  %v1880_v0 = vld [vmem:[%s2716_s2 + $0x84] ss:$8 sps:$4 sm:$0xff]  }
  0x16   :  { %924 = vmatprep.mubr.bf16.mxu1 %v1571_v51  ;;  %v1882_v1 = vld [vmem:[%s2716_s2 + $0x184] ss:$8 sps:$4 sm:$0xff]   ;;  %v1884_v2 = vld [vmem:[%s2716_s2 + $0x80] ss:$8 sps:$4 sm:$0xff]   ;;  %v1892_v4 = vld [vmem:[%s2716_s2 + $0x274] ss:$8 sps:$4 sm:$0xff]  }
  0x17   :  { %862 = vmatpush1.bf16.msra.mxu0 %v1824_v22  ;;  %v1885_v3 = vld [vmem:[%s2716_s2 + $0x180] ss:$8 sps:$4 sm:$0xff]   ;;  %v1895_v5 = vld [vmem:[%s2716_s2 + $0x374] ss:$8 sps:$4 sm:$0xff]   ;;  %v1890_v8 = vld [vmem:[%s2716_s2 + $0x270] ss:$8 sps:$4 sm:$0xff]  }
  0x18   :  { %903 = vmatpush1.bf16.msra.mxu1 %v1825_v23  ;;  %863 = vmatprep.subr.bf16.mxu0 %v1826_v24  ;;  %v1893_v9 = vld [vmem:[%s2716_s2 + $0x370] ss:$8 sps:$4 sm:$0xff]   ;;  %v1898_v10 = vld [vmem:[%s2716_s2 + $0x264] ss:$8 sps:$4 sm:$0xff]   ;;  %v1896_v12 = vld [vmem:[%s2716_s2 + $0x260] ss:$8 sps:$4 sm:$0xff]  }
  0x19   :  { %904 = vmatprep.subr.bf16.mxu1 %v1828_v25  ;;  %v1901_v11 = vld [vmem:[%s2716_s2 + $0x364] ss:$8 sps:$4 sm:$0xff]   ;;  %v1899_v13 = vld [vmem:[%s2716_s2 + $0x360] ss:$8 sps:$4 sm:$0xff]   ;;  %v1904_v14 = vld [vmem:[%s2716_s2 + $0x254] ss:$8 sps:$4 sm:$0xff]  }
  0x1a   :  { %v1907_v15 = vld [vmem:[%s2716_s2 + $0x354] ss:$8 sps:$4 sm:$0xff]   ;;  %v1902_v16 = vld [vmem:[%s2716_s2 + $0x250] ss:$8 sps:$4 sm:$0xff]   ;;  %v1910_v18 = vld [vmem:[%s2716_s2 + $0x244] ss:$8 sps:$4 sm:$0xff]  }
  0x1b   :  { %864 = vmatpush1.bf16.msra.mxu0 %v1830_v26  ;;  %v1905_v17 = vld [vmem:[%s2716_s2 + $0x350] ss:$8 sps:$4 sm:$0xff]   ;;  %v1913_v19 = vld [vmem:[%s2716_s2 + $0x344] ss:$8 sps:$4 sm:$0xff]   ;;  %v1908_v20 = vld [vmem:[%s2716_s2 + $0x240] ss:$8 sps:$4 sm:$0xff]  }
  0x1c   :  { %905 = vmatpush1.bf16.msra.mxu1 %v1831_v27  ;;  %865 = vmatprep.subr.bf16.mxu0 %v1832_v28  ;;  %v1911_v21 = vld [vmem:[%s2716_s2 + $0x340] ss:$8 sps:$4 sm:$0xff]   ;;  %v1916_v22 = vld [vmem:[%s2716_s2 + $0x234] ss:$8 sps:$4 sm:$0xff]   ;;  %v1914_v24 = vld [vmem:[%s2716_s2 + $0x230] ss:$8 sps:$4 sm:$0xff]  }
  0x1d   :  { %906 = vmatprep.subr.bf16.mxu1 %v1834_v29  ;;  %v1919_v23 = vld [vmem:[%s2716_s2 + $0x334] ss:$8 sps:$4 sm:$0xff]   ;;  %v1917_v25 = vld [vmem:[%s2716_s2 + $0x330] ss:$8 sps:$4 sm:$0xff]   ;;  %v1922_v26 = vld [vmem:[%s2716_s2 + $0x224] ss:$8 sps:$4 sm:$0xff]  }
  0x1e   :  { %v1925_v27 = vld [vmem:[%s2716_s2 + $0x324] ss:$8 sps:$4 sm:$0xff]   ;;  %v1920_v28 = vld [vmem:[%s2716_s2 + $0x220] ss:$8 sps:$4 sm:$0xff]   ;;  %v1955_v51 = vld [vmem:[%s2716_s2 + $0x3d4] ss:$8 sps:$4 sm:$0xff]  }
  0x1f   :  { %866 = vmatpush1.bf16.msra.mxu0 %v1836_v30  ;;  %v1923_v29 = vld [vmem:[%s2716_s2 + $0x320] ss:$8 sps:$4 sm:$0xff]   ;;  %v1928_v30 = vld [vmem:[%s2716_s2 + $0x214] ss:$8 sps:$4 sm:$0xff]   ;;  %v1946_v46 = vld [vmem:[%s2716_s2 + $0x2e4] ss:$8 sps:$4 sm:$0xff]  }
  0x20   :  { %907 = vmatpush1.bf16.msra.mxu1 %v1837_v31  ;;  %867 = vmatprep.subr.bf16.mxu0 %v1838_v32  ;;  %v1931_v31 = vld [vmem:[%s2716_s2 + $0x314] ss:$8 sps:$4 sm:$0xff]   ;;  %v1949_v47 = vld [vmem:[%s2716_s2 + $0x3e4] ss:$8 sps:$4 sm:$0xff]   ;;  %v1944_v48 = vld [vmem:[%s2716_s2 + $0x2e0] ss:$8 sps:$4 sm:$0xff]  }
  0x21   :  { %908 = vmatprep.subr.bf16.mxu1 %v1840_v33  ;;  %v2393_v32 = vld [vmem:[%s2717_s0 + $0x10] sm:$0xff]  ;;  %v2398_v33 = vld [vmem:[%s2717_s0 + $0x18] sm:$0xff]  ;;  %vm1551_vm8 = vcmask 785408   ;;  %vm1557_vm9 = vcmask 326656   ;;  %vm1559_vm10 = vcmask 392192  }
  0x23   :  { %868 = vmatpush2.bf16.msra.mxu0 %v1842_v34  ;;  %v1573_v34 = vcombine.high %v2393_v32, %v2393_v32 }
  0x24   :  { %909 = vmatpush2.bf16.msra.mxu1 %v1843_v35  ;;  %869 = vmatprep.subr.bf16.mxu0 %v1844_v36  ;;  %v1575_v35 = vcombine.high %v2398_v33, %v2398_v33  ;;  %v1926_v36 = vld [vmem:[%s2716_s2 + $0x210] ss:$8 sps:$4 sm:$0xff]  }
  0x25   :  { %910 = vmatprep.subr.bf16.mxu1 %v1846_v37  ;;  %v1929_v37 = vld [vmem:[%s2716_s2 + $0x310] ss:$8 sps:$4 sm:$0xff]  }
  0x27   :  { %870 = vmatpush2.bf16.msra.mxu0 %v1848_v38  ;;  %v1934_v38 = vld [vmem:[%s2716_s2 + $0x204] ss:$8 sps:$4 sm:$0xff]  }
  0x28   :  { %911 = vmatpush2.bf16.msra.mxu1 %v1849_v39  ;;  %871 = vmatprep.subr.bf16.mxu0 %v1850_v40  ;;  %v1937_v39 = vld [vmem:[%s2716_s2 + $0x304] ss:$8 sps:$4 sm:$0xff]   ;;  %v1932_v40 = vld [vmem:[%s2716_s2 + $0x200] ss:$8 sps:$4 sm:$0xff]  }
  0x29   :  { %912 = vmatprep.subr.bf16.mxu1 %v1852_v41  ;;  %v1935_v41 = vld [vmem:[%s2716_s2 + $0x300] ss:$8 sps:$4 sm:$0xff]  }
  0x2b   :  { %872 = vmatpush2.bf16.msra.mxu0 %v1854_v42  ;;  %v1940_v42 = vld [vmem:[%s2716_s2 + $0x2f4] ss:$8 sps:$4 sm:$0xff]  }
  0x2c   :  { %913 = vmatpush2.bf16.msra.mxu1 %v1855_v43  ;;  %873 = vmatprep.subr.bf16.mxu0 %v1856_v44  ;;  %v1943_v43 = vld [vmem:[%s2716_s2 + $0x3f4] ss:$8 sps:$4 sm:$0xff]   ;;  %v1938_v44 = vld [vmem:[%s2716_s2 + $0x2f0] ss:$8 sps:$4 sm:$0xff]  }
  0x2d   :  { %914 = vmatprep.subr.bf16.mxu1 %v1858_v45  ;;  %v1941_v45 = vld [vmem:[%s2716_s2 + $0x3f0] ss:$8 sps:$4 sm:$0xff]  }
  0x2f   :  { %874 = vmatpush2.bf16.msra.mxu0 %v1860_v49  ;;  %v1947_v49 = vld [vmem:[%s2716_s2 + $0x3e0] ss:$8 sps:$4 sm:$0xff]  }
  0x30   :  { %915 = vmatpush2.bf16.msra.mxu1 %v1861_v50  ;;  %875 = vmatprep.subr.bf16.mxu0 %v1862_v52  ;;  %v1952_v50 = vld [vmem:[%s2716_s2 + $0x2d4] ss:$8 sps:$4 sm:$0xff]   ;;  %v1950_v52 = vld [vmem:[%s2716_s2 + $0x2d0] ss:$8 sps:$4 sm:$0xff]  }
  0x31   :  { %916 = vmatprep.subr.bf16.mxu1 %v1864_v53  ;;  %v1953_v53 = vld [vmem:[%s2716_s2 + $0x3d0] ss:$8 sps:$4 sm:$0xff]  }
  0x33   :  { %876 = vmatpush2.bf16.msra.mxu0 %v1866_v54  ;;  %v1958_v54 = vld [vmem:[%s2716_s2 + $0x2c4] ss:$8 sps:$4 sm:$0xff]  }
  0x34   :  { %917 = vmatpush2.bf16.msra.mxu1 %v1867_v55  ;;  %877 = vmatprep.subr.bf16.mxu0 %v1868_v56  ;;  %v1961_v55 = vld [vmem:[%s2716_s2 + $0x3c4] ss:$8 sps:$4 sm:$0xff]   ;;  %v1956_v56 = vld [vmem:[%s2716_s2 + $0x2c0] ss:$8 sps:$4 sm:$0xff]  }
  0x35   :  { %918 = vmatprep.subr.bf16.mxu1 %v1870_v57  ;;  %v1959_v57 = vld [vmem:[%s2716_s2 + $0x3c0] ss:$8 sps:$4 sm:$0xff]  }
  0x37   :  { %878 = vmatpush2.bf16.msra.mxu0 %v1872_v58  ;;  %v1964_v58 = vld [vmem:[%s2716_s2 + $0x2b4] ss:$8 sps:$4 sm:$0xff]  }
  0x38   :  { %919 = vmatpush2.bf16.msra.mxu1 %v1873_v59  ;;  %879 = vmatprep.subr.bf16.mxu0 %v1874_v60  ;;  %v1967_v59 = vld [vmem:[%s2716_s2 + $0x3b4] ss:$8 sps:$4 sm:$0xff]   ;;  %v1962_v60 = vld [vmem:[%s2716_s2 + $0x2b0] ss:$8 sps:$4 sm:$0xff]  }
  0x39   :  { %920 = vmatprep.subr.bf16.mxu1 %v1876_v61  ;;  %v1965_v61 = vld [vmem:[%s2716_s2 + $0x3b0] ss:$8 sps:$4 sm:$0xff]  }
  0x3b   :  { %880 = vmatpush2.bf16.msra.mxu0 %v1878_v62  ;;  %v1970_v62 = vld [vmem:[%s2716_s2 + $0x2a4] ss:$8 sps:$4 sm:$0xff]  }
  0x3c   :  { %921 = vmatpush2.bf16.msra.mxu1 %v1879_v63  ;;  %881 = vmatprep.subr.bf16.mxu0 %v1880_v0  ;;  %v1973_v63 = vld [vmem:[%s2716_s2 + $0x3a4] ss:$8 sps:$4 sm:$0xff]   ;;  %v1968_v0 = vld [vmem:[%s2716_s2 + $0x2a0] ss:$8 sps:$4 sm:$0xff]  }
  0x3d   :  { %922 = vmatprep.subr.bf16.mxu1 %v1882_v1  ;;  %v1971_v1 = vld [vmem:[%s2716_s2 + $0x3a0] ss:$8 sps:$4 sm:$0xff]  }
  0x3f   :  { %882 = vmatpush2.bf16.msra.mxu0 %v1884_v2  ;;  %v1976_v2 = vld [vmem:[%s2716_s2 + $0x294] ss:$8 sps:$4 sm:$0xff]  }
  0x40   :  { %923 = vmatpush2.bf16.msra.mxu1 %v1885_v3  ;;  %933 = vmatprep.subr.bf16.mxu0 %v1892_v4  ;;  %v1979_v3 = vld [vmem:[%s2716_s2 + $0x394] ss:$8 sps:$4 sm:$0xff]   ;;  %v1974_v4 = vld [vmem:[%s2716_s2 + $0x290] ss:$8 sps:$4 sm:$0xff]  }
  0x41   :  { %974 = vmatprep.subr.bf16.mxu1 %v1895_v5  ;;  %v1977_v5 = vld [vmem:[%s2716_s2 + $0x390] ss:$8 sps:$4 sm:$0xff]  }
  0x42   :  { %884 = vmatmul.mubr.bf16.vlgmr.msra.gmra.mxu0 %v1568_v6  ;;  %v1982_v6 = vld [vmem:[%s2716_s2 + $0x284] ss:$8 sps:$4 sm:$0xff]  }
  0x43   :  { %925 = vmatmul.mubr.bf16.vlgmr.msra.gmra.mxu1 %v1570_v7  ;;  %934 = vmatpush1.bf16.msra.mxu0 %v1890_v8  ;;  %v1985_v7 = vld [vmem:[%s2716_s2 + $0x384] ss:$8 sps:$4 sm:$0xff]   ;;  %v1980_v8 = vld [vmem:[%s2716_s2 + $0x280] ss:$8 sps:$4 sm:$0xff]  }
  0x44   :  { %975 = vmatpush1.bf16.msra.mxu1 %v1893_v9  ;;  %935 = vmatprep.subr.bf16.mxu0 %v1898_v10  ;;  %v1983_v9 = vld [vmem:[%s2716_s2 + $0x380] ss:$8 sps:$4 sm:$0xff]   ;;  %v1572_v10 = vcombine.low %v2393_v32, %v2393_v32  ;;  %v2022_v32 = vld [vmem:[%s2718_s4 + $0x94] ss:$8 sps:$4 sm:$0xff]  }
  0x45   :  { %976 = vmatprep.subr.bf16.mxu1 %v1901_v11  ;;  %965 = vmatprep.mubr.bf16.mxu0 %v1573_v34  ;;  %v1574_v11 = vcombine.low %v2398_v33, %v2398_v33  ;;  %v2020_v33 = vld [vmem:[%s2718_s4 + $0x90] ss:$8 sps:$4 sm:$0xff]   ;;  %v2025_v34 = vld [vmem:[%s2718_s4 + $0x84] ss:$8 sps:$4 sm:$0xff]  }
  0x46   :  { %1006 = vmatprep.mubr.bf16.mxu1 %v1575_v35  ;;  %v2023_v35 = vld [vmem:[%s2718_s4 + $0x80] ss:$8 sps:$4 sm:$0xff]  }
  0x47   :  { %936 = vmatpush1.bf16.msra.mxu0 %v1896_v12  ;;  %v1990_v12 = vld [vmem:[%s2718_s4 + $0x70] ss:$8 sps:$4 sm:$0xff]  }
  0x48   :  { %977 = vmatpush1.bf16.msra.mxu1 %v1899_v13  ;;  %937 = vmatprep.subr.bf16.mxu0 %v1904_v14  ;;  %v1992_v13 = vld [vmem:[%s2718_s4 + $0x74] ss:$8 sps:$4 sm:$0xff]   ;;  %v1995_v14 = vld [vmem:[%s2718_s4 + $0x64] ss:$8 sps:$4 sm:$0xff]  }
  0x49   :  { %978 = vmatprep.subr.bf16.mxu1 %v1907_v15  ;;  %v1993_v15 = vld [vmem:[%s2718_s4 + $0x60] ss:$8 sps:$4 sm:$0xff]  }
  0x4b   :  { %938 = vmatpush1.bf16.msra.mxu0 %v1902_v16  ;;  %v1998_v16 = vld [vmem:[%s2718_s4 + $0x54] ss:$8 sps:$4 sm:$0xff]  }
  0x4c   :  { %979 = vmatpush1.bf16.msra.mxu1 %v1905_v17  ;;  %939 = vmatprep.subr.bf16.mxu0 %v1910_v18  ;;  %v1996_v17 = vld [vmem:[%s2718_s4 + $0x50] ss:$8 sps:$4 sm:$0xff]   ;;  %v2001_v18 = vld [vmem:[%s2718_s4 + $0x44] ss:$8 sps:$4 sm:$0xff]  }
  0x4d   :  { %980 = vmatprep.subr.bf16.mxu1 %v1913_v19  ;;  %v1999_v19 = vld [vmem:[%s2718_s4 + $0x40] ss:$8 sps:$4 sm:$0xff]  }
  0x4f   :  { %940 = vmatpush1.bf16.msra.mxu0 %v1908_v20  ;;  %v2004_v20 = vld [vmem:[%s2718_s4 + $0x34] ss:$8 sps:$4 sm:$0xff]  }
  0x50   :  { %981 = vmatpush1.bf16.msra.mxu1 %v1911_v21  ;;  %941 = vmatprep.subr.bf16.mxu0 %v1916_v22  ;;  %v2002_v21 = vld [vmem:[%s2718_s4 + $0x30] ss:$8 sps:$4 sm:$0xff]   ;;  %v2007_v22 = vld [vmem:[%s2718_s4 + $0x24] ss:$8 sps:$4 sm:$0xff]  }
  0x51   :  { %982 = vmatprep.subr.bf16.mxu1 %v1919_v23  ;;  %v2005_v23 = vld [vmem:[%s2718_s4 + $0x20] ss:$8 sps:$4 sm:$0xff]  }
  0x53   :  { %942 = vmatpush1.bf16.msra.mxu0 %v1914_v24  ;;  %v2010_v24 = vld [vmem:[%s2718_s4 + $0x14] ss:$8 sps:$4 sm:$0xff]  }
  0x54   :  { %983 = vmatpush1.bf16.msra.mxu1 %v1917_v25  ;;  %943 = vmatprep.subr.bf16.mxu0 %v1922_v26  ;;  %v2008_v25 = vld [vmem:[%s2718_s4 + $0x10] ss:$8 sps:$4 sm:$0xff]   ;;  %v2013_v26 = vld [vmem:[%s2718_s4 + $0x4] ss:$8 sps:$4 sm:$0xff]  }
  0x55   :  { %984 = vmatprep.subr.bf16.mxu1 %v1925_v27  ;;  %v2011_v27 = vld [vmem:[%s2718_s4] ss:$8 sps:$4 sm:$0xff]  }
  0x57   :  { %944 = vmatpush1.bf16.msra.mxu0 %v1920_v28  ;;  %v2016_v28 = vld [vmem:[%s2718_s4 + $0xb4] ss:$8 sps:$4 sm:$0xff]  }
  0x58   :  { %985 = vmatpush1.bf16.msra.mxu1 %v1923_v29  ;;  %945 = vmatprep.subr.bf16.mxu0 %v1928_v30  ;;  %v2014_v29 = vld [vmem:[%s2718_s4 + $0xb0] ss:$8 sps:$4 sm:$0xff]   ;;  %v2019_v30 = vld [vmem:[%s2718_s4 + $0xa4] ss:$8 sps:$4 sm:$0xff]  }
  0x59   :  { %986 = vmatprep.subr.bf16.mxu1 %v1931_v31  ;;  %v2017_v31 = vld [vmem:[%s2718_s4 + $0xa0] ss:$8 sps:$4 sm:$0xff]  }
  0x5b   :  { %946 = vmatpush1.bf16.msra.mxu0 %v1926_v36  ;;  %v2597_v36 = vld [vmem:[%s2719_s1] sm:$0xff] }
  0x5c   :  { %987 = vmatpush1.bf16.msra.mxu1 %v1929_v37  ;;  %947 = vmatprep.subr.bf16.mxu0 %v1934_v38 }
  0x5d   :  { %988 = vmatprep.subr.bf16.mxu1 %v1937_v39  ;;  %1489 = vrot.lane.b32.xlu1 %v2597_v36, %s2048_s18 }
  0x5f   :  { %948 = vmatpush1.bf16.msra.mxu0 %v1932_v40 }
  0x60   :  { %989 = vmatpush1.bf16.msra.mxu1 %v1935_v41  ;;  %949 = vmatprep.subr.bf16.mxu0 %v1940_v42 }
  0x61   :  { %990 = vmatprep.subr.bf16.mxu1 %v1943_v43 }
  0x63   :  { %950 = vmatpush2.bf16.msra.mxu0 %v1938_v44 }
  0x64   :  { %991 = vmatpush2.bf16.msra.mxu1 %v1941_v45  ;;  %951 = vmatprep.subr.bf16.mxu0 %v1946_v46  ;;  %v173_v45 = vlaneseq }
  0x65   :  { %992 = vmatprep.subr.bf16.mxu1 %v1949_v47 }
  0x66   :  { %v2601_v46 = vshrl.u32 %v173_v45, 7 }
  0x67   :  { %952 = vmatpush2.bf16.msra.mxu0 %v1944_v48  ;;  %v171_v48 = vld [vmem:[%s2720_s3] sm:$0x3] }
  0x68   :  { %993 = vmatpush2.bf16.msra.mxu1 %v1947_v49  ;;  %953 = vmatprep.subr.bf16.mxu0 %v1952_v50  ;;  %v175_v47 = vsub.s32 0, %v2601_v46  ;;  %v179_v49 = vsub.s32 1, %v2601_v46 }
  0x69   :  { %994 = vmatprep.subr.bf16.mxu1 %v1955_v51 }
  0x6a   :  { %v176_v50 = vrot.slane %v171_v48, %v175_v47  ;;  %v180_v51 = vrot.slane %v171_v48, %v179_v49 }
  0x6b   :  { %954 = vmatpush2.bf16.msra.mxu0 %v1950_v52 }
  0x6c   :  { %995 = vmatpush2.bf16.msra.mxu1 %v1953_v53  ;;  %955 = vmatprep.subr.bf16.mxu0 %v1958_v54 }
  0x6d   :  { %996 = vmatprep.subr.bf16.mxu1 %v1961_v55 }
  0x6f   :  { %956 = vmatpush2.bf16.msra.mxu0 %v1956_v56 }
  0x70   :  { %997 = vmatpush2.bf16.msra.mxu1 %v1959_v57  ;;  %957 = vmatprep.subr.bf16.mxu0 %v1964_v58 }
  0x71   :  { %998 = vmatprep.subr.bf16.mxu1 %v1967_v59 }
  0x73   :  { %958 = vmatpush2.bf16.msra.mxu0 %v1962_v60 }
  0x74   :  { %999 = vmatpush2.bf16.msra.mxu1 %v1965_v61  ;;  %959 = vmatprep.subr.bf16.mxu0 %v1970_v62 }
  0x75   :  { %1000 = vmatprep.subr.bf16.mxu1 %v1973_v63 }
  0x77   :  { %960 = vmatpush2.bf16.msra.mxu0 %v1968_v0 }
  0x78   :  { %1001 = vmatpush2.bf16.msra.mxu1 %v1971_v1  ;;  %961 = vmatprep.subr.bf16.mxu0 %v1976_v2 }
  0x79   :  { %1002 = vmatprep.subr.bf16.mxu1 %v1979_v3 }
  0x7b   :  { %962 = vmatpush2.bf16.msra.mxu0 %v1974_v4 }
  0x7c   :  { %1003 = vmatpush2.bf16.msra.mxu1 %v1977_v5  ;;  %963 = vmatprep.subr.bf16.mxu0 %v1982_v6 }
  0x7d   :  { %1004 = vmatprep.subr.bf16.mxu1 %v1985_v7 }
  0x7f   :  { %964 = vmatpush2.bf16.msra.mxu0 %v1980_v8  ;;  %v1043_v8 = vld [vmem:[%s2721_s5] sm:$0x3]  ;;  %s2049_s5 = smov 96  }
  0x80   :  { %1005 = vmatpush2.bf16.msra.mxu1 %v1983_v9  ;;  %1179 = vmatprep.subr.bf16.mxu0 %v1992_v13  ;;  %v1052_v9 = vrot.slane %v1043_v8, %v179_v49 }
  0x81   :  { %1507 = vrot.lane.b32.xlu1 %v2597_v36, %s2049_s5 }
  0x82   :  { %966 = vmatmul.mubr.bf16.vlgmr.msra.gmra.mxu0 %v1572_v10 }
  0x83   :  { %1007 = vmatmul.mubr.bf16.vlgmr.msra.gmra.mxu1 %v1574_v11  ;;  %1180 = vmatpush1.bf16.msra.mxu0 %v1990_v12 }
  0x84   :  { %1181 = vmatprep.subr.bf16.mxu0 %v1995_v14 }
  0x87   :  { %1182 = vmatpush1.bf16.msra.mxu0 %v1993_v15 }
  0x88   :  { %1183 = vmatprep.subr.bf16.mxu0 %v1998_v16 }
  0x8b   :  { %1184 = vmatpush1.bf16.msra.mxu0 %v1996_v17 }
  0x8c   :  { %1185 = vmatprep.subr.bf16.mxu0 %v2001_v18 }
  0x8f   :  { %1186 = vmatpush1.bf16.msra.mxu0 %v1999_v19 }
  0x90   :  { %1187 = vmatprep.subr.bf16.mxu0 %v2004_v20 }
  0x93   :  { %1188 = vmatpush1.bf16.msra.mxu0 %v2002_v21 }
  0x94   :  { %1189 = vmatprep.subr.bf16.mxu0 %v2007_v22 }
  0x97   :  { %1190 = vmatpush1.bf16.msra.mxu0 %v2005_v23 }
  0x98   :  { %1191 = vmatprep.subr.bf16.mxu0 %v2010_v24 }
  0x9b   :  { %1192 = vmatpush1.bf16.msra.mxu0 %v2008_v25 }
  0x9c   :  { %1193 = vmatprep.subr.bf16.mxu0 %v2013_v26 }
  0x9f   :  { %1194 = vmatpush1.bf16.msra.mxu0 %v2011_v27 }
  0xa0   :  { %1203 = vmatprep.subr.bf16.mxu0 %v2016_v28 }
  0xa3   :  { %1204 = vmatpush2.bf16.msra.mxu0 %v2014_v29 }
  0xa4   :  { %1205 = vmatprep.subr.bf16.mxu0 %v2019_v30 }
  0xa7   :  { %1206 = vmatpush2.bf16.msra.mxu0 %v2017_v31  ;;  %v2050_v31 = vmov 0.0  }
  0xa8   :  { %1207 = vmatprep.subr.bf16.mxu0 %v2022_v32  ;;  %1754 = vmatprep.subr.bf16.mxu1 %v2050_v31  ;;  %v1267_v32 = vld [vmem:[%s2722_s7] sm:$0xf] }
  0xa9   :  { %1756 = vmatprep.mubr.msk.bf16.mxu1 %vm2052_vm4, %v2050_v31 }
  0xab   :  { %1208 = vmatpush2.bf16.msra.mxu0 %v2020_v33  ;;  %v1273_v33 = vsel %vm1271_vm3, %v1267_v32, 0 }
  0xac   :  { %1209 = vmatprep.subr.bf16.mxu0 %v2025_v34  ;;  %1755 = vmatpush3.bf16.msra.mxu1 %v1273_v33  ;;  %v1048_v34 = vrot.slane %v1043_v8, %v175_v47 }
  0xad   :  { %1760 = vmatprep.subr.bf16.mxu1 %v2050_v31 }
  0xaf   :  { %1210 = vmatpush2.bf16.msra.mxu0 %v2023_v35 }
 0x102   :  { %v885_v37 = vpop.f32.mrf.mxu0 }
 0x103   :  { %v926_v38 = vpop.f32.mrf.mxu1  ;;  %v886_v52 = vadd.f32 %v885_v37, %v176_v50 }
 0x104   :  { %v887_v39 = vpop.f32.mrf.mxu0 }
 0x105   :  { %v928_v40 = vpop.f32.mrf.mxu1  ;;  %v888_v53 = vadd.f32 %v887_v39, %v180_v51  ;;  %v927_v54 = vadd.f32 %v926_v38, %v886_v52 }
 0x106   :  { %v889_v41 = vpop.f32.mrf.mxu0 }
 0x107   :  { %v930_v42 = vpop.f32.mrf.mxu1  ;;  %v929_v57 = vadd.f32 %v928_v40, %v888_v53 }
 0x108   :  { %v890_v43 = vpop.f32.mrf.mxu0 }
 0x109   :  { %v931_v44 = vpop.f32.mrf.mxu1 }
 0x142   :  { %v967_v55 = vpop.f32.mrf.mxu0 }
 0x143   :  { %v1008_v56 = vpop.f32.mrf.mxu1  ;;  %v968_v58 = vadd.f32 %v967_v55, %v927_v54  ;;  %v1490_v54 = vpop.permute.xlu1 %1489 }
 0x144   :  { %v969_v59 = vpop.f32.mrf.mxu0 }
 0x145   :  { %v1010_v60 = vpop.f32.mrf.mxu1  ;;  %v1009_v61 = vadd.f32 %v1008_v56, %v968_v58  ;;  %v970_v62 = vadd.f32 %v969_v59, %v929_v57  ;;  %v2026_v58 = vld [vmem:[%s2723_s6 + $0x18] sm:$0xff]  }
 0x146   :  { %v971_v63 = vpop.f32.mrf.mxu0 }
 0x147   :  { %v1012_v0 = vpop.f32.mrf.mxu1  ;;  %v1011_v1 = vadd.f32 %v1010_v60, %v970_v62  ;;  %v1015_v2 = vmax.f32 %v1009_v61, 0.0  ;;  %v2027_v60 = vld [vmem:[%s2723_s6 + $0x10] sm:$0xff]   ;;  %v2028_v61 = vld [vmem:[%s2723_s6 + $0x8] sm:$0xff]   ;;  %v2029_v62 = vld [vmem:[%s2723_s6] sm:$0xff]  }
 0x148   :  { %v972_v3 = vpop.f32.mrf.mxu0  ;;  %v2030_v63 = vld [vmem:[%s2724_s9 + $0x18] sm:$0xff]   ;;  %v2031_v0 = vld [vmem:[%s2724_s9 + $0x10] sm:$0xff]  }
 0x149   :  { %v1013_v4 = vpop.f32.mrf.mxu1  ;;  %v1016_v5 = vmax.f32 %v1011_v1, 0.0  ;;  %v1017_v7 = vpack.c.bf16 %v1015_v2, %v1015_v2  ;;  %v2032_v1 = vld [vmem:[%s2724_s9 + $0x8] sm:$0xff]   ;;  %v2033_v2 = vld [vmem:[%s2724_s9] sm:$0xff]   ;;  %v1508_v3 = vpop.permute.xlu1 %1507 }
 0x14b   :  { %v2610_v6 = vpack.c.bf16 %v1016_v5, %v1016_v5 }
 0x14d   :  { %1728 = vmatprep.mubr.msk.bf16.mxu0 %vm1175_vm0, %v2610_v6 }
 0x14e   :  { %1212 = vmatmul.mubr.bf16.vlgmr.msra.gmra.mxu0 %v1017_v7 }
 0x20e   :  { %v1213_v10 = vpop.f32.mrf.mxu0 }
 0x20f   :  { %v2632_v35 = vadd.f32 %v1213_v10, %v1048_v34 }
 0x210   :  { %v1215_v11 = vpop.f32.mrf.mxu0 }
 0x211   :  { %v1216_v12 = vadd.f32 %v1215_v11, %v1052_v9  ;;  %v1221_v37 = vand.u32 2147483647, %v2632_v35  ;;  %v1220_v46 = vmax.f32 %v2632_v35, 0.0 }
 0x212   :  { %v1217_v13 = vpop.f32.mrf.mxu0 }
 0x213   :  { %v1237_v14 = vand.u32 2147483647, %v1216_v12  ;;  %v1236_v26 = vmax.f32 %v1216_v12, 0.0  ;;  %v1222_v38 = vsub.f32 0.0, %v1221_v37  ;;  %v1735_v13 = vld [vmem:[%s2725_s8] ss:$0 sm:$0xff] }
 0x214   :  { %v1218_v15 = vpop.f32.mrf.mxu0 }
 0x215   :  { %v1238_v16 = vsub.f32 0.0, %v1237_v14  ;;  %v1223_v39 = vmul.f32 1.442695, %v1222_v38 }
 0x217   :  { %v1239_v17 = vmul.f32 1.442695, %v1238_v16 }
 0x219   :  { %2034 = vpow2.f32 %v1239_v17 }
 0x226   :  { %v2035_v18 = vpop.eup %2034 }
 0x227   :  { %v1241_v19 = vadd.f32 1.0, %v2035_v18  ;;  %v1244_v20 = vmul.f32 -0.5, %v2035_v18  ;;  %v1247_v22 = vand.u32 2147483647, %v2035_v18 }
 0x229   :  { %2036 = vlog2.f32 %v1241_v19  ;;  %v1245_v21 = vadd.f32 1.0, %v1244_v20  ;;  %vm1248_vm1 = vcmp.lt.f32.partialorder %v1247_v22, 0.0004427343 }
 0x22a   :  { %2038 = vpow2.f32 %v1223_v39 }
 0x22b   :  { %v1246_v25 = vmul.f32 %v2035_v18, %v1245_v21  ;;  %v1736_v21 = vld [vmem:[%s2726_s10] ss:$0 sm:$0xff] }
 0x236   :  { %v2037_v23 = vpop.eup %2036 }
 0x237   :  { %v1243_v24 = vmul.f32 0.6931472, %v2037_v23  ;;  %v2039_v40 = vpop.eup %2038 }
 0x238   :  { %v1225_v41 = vadd.f32 1.0, %v2039_v40  ;;  %v1231_v44 = vand.u32 2147483647, %v2039_v40 }
 0x239   :  { %v1249_v27 = vsel %vm1248_vm1, %v1246_v25, %v1243_v24 }
 0x23a   :  { %v1250_v28 = vadd.f32 %v1249_v27, %v1236_v26  ;;  %2040 = vlog2.f32 %v1225_v41  ;;  %vm1232_vm5 = vcmp.lt.f32.partialorder %v1231_v44, 0.0004427343 }
 0x23c   :  { %v1251_v29 = vadd.f32 1e-06, %v1250_v28 }
 0x23e   :  { %v1253_v30 = vsel %vm1252_vm2, %v1251_v29, 0.0 }
 0x23f   :  { %1254 = vadd.xlane.f32.xlu0 %v1253_v30 }
 0x247   :  { %v2041_v42 = vpop.eup %2040 }
 0x248   :  { %v1227_v45 = vmul.f32 0.6931472, %v2041_v42 }
 0x255   :  { %1498 = vrot.lane.b32.xlu0 %v2597_v36, %s2051_s21  ;;  %v1228_v36 = vmul.f32 -0.5, %v2039_v40 }
 0x257   :  { %v1229_v43 = vadd.f32 1.0, %v1228_v36 }
 0x259   :  { %1541 = vrot.lane.b32.xlu0 %v1251_v29, %s2048_s18  ;;  %v1230_v48 = vmul.f32 %v2039_v40, %v1229_v43 }
 0x25b   :  { %v1233_v49 = vsel %vm1232_vm5, %v1230_v48, %v1227_v45 }
 0x25c   :  { %v1234_v47 = vadd.f32 %v1233_v49, %v1220_v46 }
 0x25e   :  { %v2636_v51 = vadd.f32 1e-06, %v1234_v47 }
 0x260   :  { %v1492_v55 = vmul.f32 %v1490_v54, %v2636_v51  ;;  %v1549_v47 = vsel %vm1548_vm7, %v2632_v35, %v2636_v51 }
 0x2c8   :  { %v1255_v50 = vpop.xlane.xlu0 %1254 }
 0x2c9   :  { %2042 = vrcp.f32 %v1255_v50 }
 0x2cc   :  { %v1499_v52 = vpop.permute.xlu0 %1498 }
 0x2cd   :  { %v1501_v53 = vmul.f32 %v1499_v52, %v2636_v51 }
 0x2cf   :  { %1503 = vrot.lane.b32.xlu1 %v1501_v53, %s2049_s5 }
 0x2d0   :  { %v1542_v48 = vpop.permute.xlu0 %1541 }
 0x2d3   :  { %1494 = vrot.lane.b32.xlu1 %v1492_v55, %s2049_s5 }
 0x2d6   :  { %v2043_v56 = vpop.eup %2042 }
 0x2d7   :  { %1525 = vrot.lane.b32.xlu1 %v2636_v51, %s2048_s18  ;;  %v1257_v57 = vmul.f32 %v2043_v56, %v1251_v29 }
 0x2d9   :  { %v1266_v59 = vpack.c.bf16 %v1257_v57, %v1257_v57 }
 0x2db   :  { %1757 = vmatmul.mubr.msk.bf16.vlgmr.msra.gmra.mxu1 %vm1252_vm2, %v1266_v59 }
 0x2dc   :  { %1761 = vmatpush3.bf16.msra.mxu1 %v2026_v58  ;;  %1768 = vmatprep.mubr.msk.bf16.mxu1 %vm2052_vm4, %v2050_v31 }
 0x2dd   :  { %1762 = vmatprep.subr.bf16.mxu1 %v2050_v31 }
 0x2e0   :  { %1763 = vmatpush3.bf16.msra.mxu1 %v2027_v60 }
 0x2e1   :  { %1764 = vmatprep.subr.bf16.mxu1 %v2050_v31 }
 0x2e4   :  { %1765 = vmatpush3.bf16.msra.mxu1 %v2028_v61 }
 0x2e5   :  { %1766 = vmatprep.subr.bf16.mxu1 %v2050_v31 }
 0x2e8   :  { %1767 = vmatpush3.bf16.msra.mxu1 %v2029_v62 }
 0x2e9   :  { %1772 = vmatprep.subr.bf16.mxu1 %v2050_v31 }
 0x2eb   :  { %1769 = vmatmul.mubr.msk.bf16.vlgmr.msra.gmra.mxu1 %vm1175_vm0, %v2610_v6 }
 0x2ec   :  { %1780 = vmatprep.mubr.msk.bf16.mxu1 %vm2052_vm4, %v2050_v31  ;;  %1773 = vmatpush3.bf16.msra.mxu1 %v2030_v63 }
 0x2ed   :  { %1774 = vmatprep.subr.bf16.mxu1 %v2050_v31 }
 0x2f0   :  { %1775 = vmatpush3.bf16.msra.mxu1 %v2031_v0 }
 0x2f1   :  { %1776 = vmatprep.subr.bf16.mxu1 %v2050_v31 }
 0x2f4   :  { %1777 = vmatpush3.bf16.msra.mxu1 %v2032_v1 }
 0x2f5   :  { %1778 = vmatprep.subr.bf16.mxu1 %v2050_v31 }
 0x2f8   :  { %1779 = vmatpush3.bf16.msra.mxu1 %v2033_v2 }
 0x341   :  { %v1504_v4 = vpop.permute.xlu1 %1503 }
 0x342   :  { %v1506_v5 = vadd.f32 %v1504_v4, %v2632_v35 }
 0x344   :  { %1529 = vrot.lane.b32.xlu1 %v1506_v5, %s2049_s5 }
 0x345   :  { %v1495_v6 = vpop.permute.xlu1 %1494 }
 0x346   :  { %v1497_v7 = vadd.f32 %v1495_v6, %v2632_v35 }
 0x348   :  { %1517 = vrot.lane.b32.xlu1 %v1497_v7, %s2051_s21 }
 0x349   :  { %v1526_v44 = vpop.permute.xlu1 %1525 }
 0x34c   :  { %1545 = vrot.lane.b32.xlu1 %v1257_v57, %s2053_s16 }
 0x39b   :  { %v1309_v8 = vpop.f32.mrf.mxu1 }
 0x39d   :  { %v1758_v9 = vpop.f32.mrf.mxu1 }
 0x39f   :  { %v1312_v10 = vpop.f32.mrf.mxu1 }
 0x3a1   :  { %v1759_v11 = vpop.f32.mrf.mxu1 }
 0x3ab   :  { %v1373_v12 = vpop.f32.mrf.mxu1 }
 0x3ac   :  { %v1374_v14 = vadd.f32 %v1373_v12, %v1309_v8 }
 0x3ad   :  { %v1770_v15 = vpop.f32.mrf.mxu1 }
 0x3ae   :  { %v1386_v16 = vadd.f32 %v1735_v13, %v1374_v14 }
 0x3af   :  { %v1376_v17 = vpop.f32.mrf.mxu1 }
 0x3b0   :  { %v1387_v18 = vmax.f32 %v1386_v16, 0.0 }
 0x3b1   :  { %v1771_v19 = vpop.f32.mrf.mxu1 }
 0x3b2   :  { %v1388_v20 = vpack.c.bf16 %v1387_v18, %v1387_v18 }
 0x3b4   :  { %1781 = vmatmul.mubr.msk.bf16.vlgmr.msra.gmra.mxu1 %vm1175_vm0, %v1388_v20 }
 0x3b6   :  { %v1530_v45 = vpop.permute.xlu1 %1529 }
 0x3b7   :  { %v1553_v57 = vsel %vm1548_vm7, %v1526_v44, %v1530_v45 }
 0x3ba   :  { %v1518_v46 = vpop.permute.xlu1 %1517 }
 0x3bb   :  { %v1550_v50 = vsel %vm1175_vm0, %v1549_v47, %v1518_v46 }
 0x3be   :  { %v1546_v54 = vpop.permute.xlu1 %1545 }
 0x474   :  { %v1465_v22 = vpop.f32.mrf.mxu1 }
 0x475   :  { %v1466_v23 = vadd.f32 %v1736_v21, %v1465_v22 }
 0x476   :  { %v1782_v24 = vpop.f32.mrf.mxu1 }
 0x477   :  { %v1472_v25 = vand.u32 2147483647, %v1466_v23  ;;  %1533 = vrot.lane.b32.xlu0 %v1466_v23, %s2051_s21  ;;  %v1471_v40 = vmax.f32 %v1466_v23, 0.0 }
 0x478   :  { %v1468_v26 = vpop.f32.mrf.mxu1 }
 0x479   :  { %v1473_v27 = vsub.f32 0.0, %v1472_v25 }
 0x47a   :  { %v1783_v28 = vpop.f32.mrf.mxu1 }
 0x47b   :  { %v1474_v29 = vmul.f32 1.442695, %v1473_v27  ;;  %1521 = vrot.lane.b32.xlu0 %v2632_v35, %s2048_s18 }
 0x47d   :  { %2044 = vpow2.f32 %v1474_v29 }
 0x48a   :  { %v2045_v30 = vpop.eup %2044 }
 0x48b   :  { %v1476_v31 = vadd.f32 1.0, %v2045_v30  ;;  %v1479_v32 = vmul.f32 -0.5, %v2045_v30  ;;  %v1482_v34 = vand.u32 2147483647, %v2045_v30 }
 0x48d   :  { %2046 = vlog2.f32 %v1476_v31  ;;  %v1480_v33 = vadd.f32 1.0, %v1479_v32  ;;  %vm1483_vm6 = vcmp.lt.f32.partialorder %v1482_v34, 0.0004427343 }
 0x48f   :  { %v1481_v39 = vmul.f32 %v2045_v30, %v1480_v33 }
 0x49a   :  { %v2047_v37 = vpop.eup %2046 }
 0x49b   :  { %v1478_v38 = vmul.f32 0.6931472, %v2047_v37 }
 0x49d   :  { %v1484_v41 = vsel %vm1483_vm6, %v1481_v39, %v1478_v38 }
 0x49e   :  { %v1485_v36 = vadd.f32 %v1484_v41, %v1471_v40 }
 0x4a0   :  { %v1486_v42 = vadd.f32 1e-06, %v1485_v36 }
 0x4a2   :  { %v1510_v43 = vmul.f32 %v1508_v3, %v1486_v42 }
 0x4a4   :  { %1512 = vrot.lane.b32.xlu1 %v1510_v43, %s2049_s5 }
 0x4a8   :  { %1537 = vrot.lane.b32.xlu1 %v1486_v42, %s2051_s21 }
 0x4e9   :  { %v1534_v49 = vpop.permute.xlu0 %1533 }
 0x4ea   :  { %v1554_v35 = vsel %vm1175_vm0, %v1553_v57, %v1534_v49 }
 0x4ed   :  { %v1522_v52 = vpop.permute.xlu0 %1521 }
 0x4ee   :  { %v1552_v53 = vsel %vm1551_vm8, %v1550_v50, %v1522_v52 }
 0x4ef   :  { %1561 = vst [vmem:[%s2727_s11] sm:$0xff] %v1552_v53 }
 0x516   :  { %v1513_v55 = vpop.permute.xlu1 %1512 }
 0x517   :  { %v1515_v56 = vadd.f32 %v1513_v55, %v1466_v23 }
 0x519   :  { %v1556_v58 = vsel %vm1548_vm7, %v1515_v56, %v1542_v48 }
 0x51a   :  { %v1558_v51 = vsel %vm1557_vm9, %v1556_v58, %v1546_v54  ;;  %v1538_v59 = vpop.permute.xlu1 %1537 }
 0x51b   :  { %v1560_v60 = vsel %vm1559_vm10, %v1558_v51, 0.0  ;;  %v1555_v61 = vsel %vm1551_vm8, %v1554_v35, %v1538_v59 }
 0x51c   :  { %1563 = vst [vmem:[%s2727_s11 + $0x10] sm:$0xff] %v1560_v60  ;;  %1562 = vst [vmem:[%s2727_s11 + $0x8] sm:$0xff] %v1555_v61 }

</bundles_post_ra>
